<compile_context>
chip_gen: v6e
topology: v6e:2x2x1
jax: 0.10.0
libtpu: 0.0.40
codegen_flags: <defaults>
</compile_context>

<pallas_src>
import functools

import jax
import jax.numpy as jnp
from jax import lax
from jax.experimental import pallas as pl
from jax.experimental.pallas import tpu as pltpu


def _round_up(n, m):
    return ((n + m - 1) // m) * m


def _attention_kernel(x_ref, wqkv_ref, wp_ref, bp_ref, o_ref,
                      q_sc, k_sc, v_sc, *, num_heads, seq_len, q_tile):
    qi = pl.program_id(1)
    H = num_heads
    n_pad, C = k_sc.shape
    D = C // H

    # Once per batch element: fused QKV projection of the full (padded)
    # sequence in a single long MXU pass. The softmax scale is already folded
    # into the Q columns of wqkv, so q_sc holds pre-scaled queries.
    @pl.when(qi == 0)
    def _():
        qkv = jnp.dot(x_ref[0], wqkv_ref[...],
                      preferred_element_type=jnp.float32)        # (n_pad, 3C)
        q_sc[...] = qkv[:, :C].astype(jnp.bfloat16)
        k_sc[...] = qkv[:, C:2 * C].astype(jnp.bfloat16)
        v_sc[...] = qkv[:, 2 * C:].astype(jnp.bfloat16)

    row = pl.multiple_of(qi * q_tile, q_tile)
    q = q_sc[pl.ds(row, q_tile), :]                               # (tq, C) bf16
    k = k_sc[...]                                                 # (n_pad, C)
    v = v_sc[...]                                                 # (n_pad, C)

    # Mask for padded key columns (only materialized if padding exists).
    if seq_len < n_pad:
        key_idx = lax.broadcasted_iota(jnp.int32, (1, n_pad), 1)
        key_mask = key_idx < seq_len                              # (1, n_pad)
    else:
        key_mask = None

    # TODO(synk): attn_drop / proj_drop omitted (ratio=0.0 -> identity in eval).
    ctx_heads = []
    for h in range(H):                                            # static unroll
        qh = q[:, h * D:(h + 1) * D]                              # (tq, D)
        kh = k[:, h * D:(h + 1) * D]                              # (n_pad, D)
        vh = v[:, h * D:(h + 1) * D]                              # (n_pad, D)

        # Scores: contract over D along the last dim of both (no transpose).
        s = lax.dot_general(qh, kh, (((1,), (1,)), ((), ())),
                            preferred_element_type=jnp.float32)   # (tq, n_pad)
        if key_mask is not None:
            s = jnp.where(key_mask, s, jnp.float32(-1e30))

        # Numerically stable softmax in f32; normalization deferred.
        s = s - jnp.max(s, axis=-1, keepdims=True)
        p = jnp.exp(s)
        l = jnp.sum(p, axis=-1, keepdims=True)                    # (tq, 1)

        ctx = jnp.dot(p.astype(jnp.bfloat16), vh,
                      preferred_element_type=jnp.float32)         # (tq, D)
        ctx = ctx * pl.reciprocal(l, approx=True)                 # deferred 1/l
        ctx_heads.append(ctx.astype(jnp.bfloat16))

    # Head merge = lane concatenation at offsets h*D (no XLU transpose).
    ctx_nc = jnp.concatenate(ctx_heads, axis=-1)                  # (tq, C) bf16

    y = jnp.dot(ctx_nc, wp_ref[...], preferred_element_type=jnp.float32)
    o_ref[0] = (y + bp_ref[...]).astype(o_ref.dtype)


def _const_weight_spec(shape):
    """BlockSpec for a grid-invariant weight; single-buffer when supported."""
    idx = lambda b, qi: (0,) * len(shape)
    if hasattr(pl, "Buffered"):
        try:
            return pl.BlockSpec(shape, idx, pipeline_mode=pl.Buffered(1))
        except TypeError:
            pass
    # Fallback: double-buffered grid-invariant weight (extra VMEM, still fits).
    return pl.BlockSpec(shape, idx)


def attention_pallas(x, qkv_weight, proj_weight, proj_bias, *, num_heads,
                     qk_scale=None, q_tile=128):
    """Forward pass of the ViT Attention module.

    qkv_weight:  (3C, C)  PyTorch layout (out, in), no bias (qkv_bias=False)
    proj_weight: (C, C)   PyTorch layout (out, in)
    proj_bias:   (C,)
    """
    B, N, C = x.shape
    H = num_heads
    assert C % H == 0
    D = C // H
    scale = float(qk_scale) if qk_scale is not None else float(D) ** (-0.5)

    # Query-row tiling: 128-row tiles with N padded up to a tile multiple;
    # short sequences shrink the tile to the next multiple of 8 instead.
    if N < q_tile:
        q_tile = _round_up(N, 8)
    n_pad = _round_up(N, q_tile)
    n_q = n_pad // q_tile

    xb = x.astype(jnp.bfloat16)
    if n_pad != N:
        xb = jnp.pad(xb, ((0, 0), (0, n_pad - N), (0, 0)))

    # Fused (C, 3C) QKV weight in (in, out) layout; fold the softmax scale
    # into the Q columns (exact for the default power-of-two scale).
    w_qkv = qkv_weight.T.astype(jnp.float32)
    w_qkv = w_qkv.at[:, :C].multiply(scale).astype(jnp.bfloat16)
    w_p = proj_weight.T.astype(jnp.bfloat16)
    b_p = proj_bias.reshape(1, C).astype(jnp.float32)

    kernel = functools.partial(_attention_kernel, num_heads=H, seq_len=N,
                               q_tile=q_tile)

    out = pl.pallas_call(
        kernel,
        out_shape=jax.ShapeDtypeStruct((B, n_pad, C), x.dtype),
        grid_spec=pltpu.PrefetchScalarGridSpec(
            num_scalar_prefetch=0,
            grid=(B, n_q),
            in_specs=[
                pl.BlockSpec((1, n_pad, C), lambda b, qi: (b, 0, 0)),  # x, full seq
                _const_weight_spec((C, 3 * C)),                        # fused W_qkv
                _const_weight_spec((C, C)),                            # W_proj
                _const_weight_spec((1, C)),                            # b_proj
            ],
            out_specs=pl.BlockSpec((1, q_tile, C), lambda b, qi: (b, qi, 0)),
            scratch_shapes=[
                pltpu.VMEM((n_pad, C), jnp.bfloat16),   # q (pre-scaled)
                pltpu.VMEM((n_pad, C), jnp.bfloat16),   # k
                pltpu.VMEM((n_pad, C), jnp.bfloat16),   # v
            ],
        ),
        compiler_params=pltpu.CompilerParams(
            # B parallel (megacore / v7x dual-TC when B >= 2); q-tile axis must
            # be "arbitrary" so the persistent K/V scratch is reused in order.
            dimension_semantics=("parallel", "arbitrary"),
            vmem_limit_bytes=48 * 1024 * 1024,   # <= v7x physical 64 MiB
        ),
    )(xb, w_qkv, w_p, b_p)

    return out[:, :N, :] if n_pad != N else out


def reference_attention(x, qkv_weight, proj_weight, proj_bias, num_heads,
                        qk_scale=None):
    """Plain-JAX mirror of the PyTorch module (PyTorch weight layout)."""
    B, N, C = x.shape
    H, D = num_heads, C // num_heads
    scale = qk_scale if qk_scale is not None else D ** (-0.5)
    qkv = (x @ qkv_weight.T).reshape(B, N, 3, H, D)
    q, k, v = qkv[:, :, 0], qkv[:, :, 1], qkv[:, :, 2]
    attn = jnp.einsum("bqhd,bkhd->bhqk", q, k) * scale
    attn = jax.nn.softmax(attn, axis=-1)
    ctx = jnp.einsum("bhqk,bkhd->bqhd", attn, v).reshape(B, N, C)
    return ctx @ proj_weight.T + proj_bias


if __name__ == "__main__":
    def _make_case(key, B, N, C):
        kx, kqkv, kp, kb = jax.random.split(key, 4)
        x = jax.random.normal(kx, (B, N, C), dtype=jnp.float32)
        w_qkv = jax.random.normal(kqkv, (3 * C, C), dtype=jnp.float32) * 0.05
        w_proj = jax.random.normal(kp, (C, C), dtype=jnp.float32) * 0.05
        b_proj = jax.random.normal(kb, (C,), dtype=jnp.float32) * 0.01
        return x, w_qkv, w_proj, b_proj

    def _r(a):  # kernel uses bf16 operands with f32 accumulation
        return a.astype(jnp.bfloat16).astype(jnp.float32)

    def _check(B, N, C, H, q_tile):
        x, w_qkv, w_proj, b_proj = _make_case(jax.random.PRNGKey(0), B, N, C)
        out = attention_pallas(x, w_qkv, w_proj, b_proj, num_heads=H,
                               q_tile=q_tile)
        out = jax.block_until_ready(out)
        ref = reference_attention(_r(x), _r(w_qkv), _r(w_proj), b_proj, H)
        err = float(jnp.max(jnp.abs(out - ref)))
        assert jnp.allclose(out, ref, atol=2e-2, rtol=2e-2), (
            f"mismatch (B={B}, N={N}, C={C}, H={H}): max abs err = {err}")

    # Small shapes consistent with the module: dim=C=32, num_heads=8 -> D=4.
    _check(B=2, N=8, C=32, H=8, q_tile=128)   # single tile, no padding
    # Exercise padding + key masking + multiple query tiles reusing the
    # persistent K/V scratch: N=20 -> padded to 24, three 8-row tiles.
    _check(B=2, N=20, C=32, H=8, q_tile=8)

    print("KERNEL_OK")
</pallas_src>

<mosaic_0001>
module attributes {stable_mosaic.version = 11 : i64} {
  func.func @_attention_kernel(%arg0: i32, %arg1: i32, %arg2: memref<1x8x32xbf16, #tpu.memory_space<vmem>>, %arg3: memref<32x96xbf16, #tpu.memory_space<vmem>>, %arg4: memref<32x32xbf16, #tpu.memory_space<vmem>>, %arg5: memref<1x32xf32, #tpu.memory_space<vmem>>, %arg6: memref<1x8x32xf32, #tpu.memory_space<vmem>>, %arg7: memref<8x32xbf16, #tpu.memory_space<vmem>>, %arg8: memref<8x32xbf16, #tpu.memory_space<vmem>>, %arg9: memref<8x32xbf16, #tpu.memory_space<vmem>>) attributes {dimension_semantics = [#tpu.dimension_semantics<parallel>, #tpu.dimension_semantics<arbitrary>], iteration_bounds = array<i64: 2, 1>, scalar_prefetch = 0 : i64, scratch_operands = 3 : i64, tpu.core_type = #tpu.core_type<tc>, window_params = [{transform_indices = @transform_0, window_bounds = array<i64: 1, 8, 32>}, {pipeline_mode = #tpu.pipeline_mode<synchronous>, transform_indices = @transform_1, window_bounds = array<i64: 32, 96>}, {pipeline_mode = #tpu.pipeline_mode<synchronous>, transform_indices = @transform_2, window_bounds = array<i64: 32, 32>}, {pipeline_mode = #tpu.pipeline_mode<synchronous>, transform_indices = @transform_3, window_bounds = array<i64: 1, 32>}, {transform_indices = @transform_4, window_bounds = array<i64: 1, 8, 32>}]} {
    %c0_i32 = arith.constant 0 : i32
    %0 = arith.cmpi eq, %arg1, %c0_i32 : i32
    %1 = arith.extui %0 : i1 to i32
    %c0_i32_0 = arith.constant 0 : i32
    %2 = arith.cmpi ne, %1, %c0_i32_0 : i32
    scf.if %2 {
      %c0_44 = arith.constant 0 : index
      %c0_45 = arith.constant 0 : index
      %c0_46 = arith.constant 0 : index
      %154 = vector.load %arg2[%c0_44, %c0_45, %c0_46] : memref<1x8x32xbf16, #tpu.memory_space<vmem>>, vector<1x8x32xbf16>
      %155 = vector.shape_cast %154 : vector<1x8x32xbf16> to vector<8x32xbf16>
      %c0_47 = arith.constant 0 : index
      %c0_48 = arith.constant 0 : index
      %156 = vector.load %arg3[%c0_47, %c0_48] : memref<32x96xbf16, #tpu.memory_space<vmem>>, vector<32x96xbf16>
      %cst_49 = arith.constant dense<0.000000e+00> : vector<8x96xf32>
      %157 = tpu.matmul %155, %156, %cst_49 {dimension_numbers = #tpu.dot_dimension_numbers<[1], [0], [0], [1], [0, 0, 1, 1], [], []>} : vector<8x32xbf16>, vector<32x96xbf16>, vector<8x96xf32> -> vector<8x96xf32>
      %158 = vector.extract_strided_slice %157 {offsets = [0, 0], sizes = [8, 32], strides = [1, 1]} : vector<8x96xf32> to vector<8x32xf32>
      %159 = arith.truncf %158 : vector<8x32xf32> to vector<8x32xbf16>
      %c0_50 = arith.constant 0 : index
      %c0_51 = arith.constant 0 : index
      %160 = vector.load %arg7[%c0_50, %c0_51] : memref<8x32xbf16, #tpu.memory_space<vmem>>, vector<8x32xbf16>
      tpu.vector_store %arg7[%c0_50, %c0_51], %159 {strides = array<i32>} : memref<8x32xbf16, #tpu.memory_space<vmem>>, vector<8x32xbf16>,
      %161 = vector.extract_strided_slice %157 {offsets = [0, 32], sizes = [8, 32], strides = [1, 1]} : vector<8x96xf32> to vector<8x32xf32>
      %162 = arith.truncf %161 : vector<8x32xf32> to vector<8x32xbf16>
      %c0_52 = arith.constant 0 : index
      %c0_53 = arith.constant 0 : index
      %163 = vector.load %arg8[%c0_52, %c0_53] : memref<8x32xbf16, #tpu.memory_space<vmem>>, vector<8x32xbf16>
      tpu.vector_store %arg8[%c0_52, %c0_53], %162 {strides = array<i32>} : memref<8x32xbf16, #tpu.memory_space<vmem>>, vector<8x32xbf16>,
      %164 = vector.extract_strided_slice %157 {offsets = [0, 64], sizes = [8, 32], strides = [1, 1]} : vector<8x96xf32> to vector<8x32xf32>
      %165 = arith.truncf %164 : vector<8x32xf32> to vector<8x32xbf16>
      %c0_54 = arith.constant 0 : index
      %c0_55 = arith.constant 0 : index
      %166 = vector.load %arg9[%c0_54, %c0_55] : memref<8x32xbf16, #tpu.memory_space<vmem>>, vector<8x32xbf16>
      tpu.vector_store %arg9[%c0_54, %c0_55], %165 {strides = array<i32>} : memref<8x32xbf16, #tpu.memory_space<vmem>>, vector<8x32xbf16>,
    } else {
    }
    %c8_i32 = arith.constant 8 : i32
    %3 = arith.muli %arg1, %c8_i32 : i32
    %4 = tpu.assume_multiple %3, 8 : i32
    %5 = arith.index_cast %4 : i32 to index
    %c0 = arith.constant 0 : index
    %6 = vector.load %arg7[%5, %c0] : memref<8x32xbf16, #tpu.memory_space<vmem>>, vector<8x32xbf16>
    %c0_1 = arith.constant 0 : index
    %c0_2 = arith.constant 0 : index
    %7 = vector.load %arg8[%c0_1, %c0_2] : memref<8x32xbf16, #tpu.memory_space<vmem>>, vector<8x32xbf16>
    %c0_3 = arith.constant 0 : index
    %c0_4 = arith.constant 0 : index
    %8 = vector.load %arg9[%c0_3, %c0_4] : memref<8x32xbf16, #tpu.memory_space<vmem>>, vector<8x32xbf16>
    %9 = vector.extract_strided_slice %6 {offsets = [0, 0], sizes = [8, 4], strides = [1, 1]} : vector<8x32xbf16> to vector<8x4xbf16>
    %10 = vector.extract_strided_slice %7 {offsets = [0, 0], sizes = [8, 4], strides = [1, 1]} : vector<8x32xbf16> to vector<8x4xbf16>
    %11 = vector.extract_strided_slice %8 {offsets = [0, 0], sizes = [8, 4], strides = [1, 1]} : vector<8x32xbf16> to vector<8x4xbf16>
    %cst = arith.constant dense<0.000000e+00> : vector<8x8xf32>
    %12 = tpu.matmul %9, %10, %cst {dimension_numbers = #tpu.dot_dimension_numbers<[1], [1], [0], [0], [0, 0, 1, 0], [], []>} : vector<8x4xbf16>, vector<8x4xbf16>, vector<8x8xf32> -> vector<8x8xf32>
    %cst_5 = arith.constant dense<0xFF800000> : vector<8xf32>
    %13 = vector.multi_reduction <maximumf>, %12, %cst_5 [1] : vector<8x8xf32> to vector<8xf32>
    %14 = vector.shape_cast %13 : vector<8xf32> to vector<8x1xf32>
    %15 = vector.broadcast %14 : vector<8x1xf32> to vector<8x8xf32>
    %16 = arith.subf %12, %15 : vector<8x8xf32>
    %17 = math.exp %16 : vector<8x8xf32>
    %cst_6 = arith.constant dense<0.000000e+00> : vector<8xf32>
    %18 = vector.multi_reduction <add>, %17, %cst_6 [1] : vector<8x8xf32> to vector<8xf32>
    %19 = vector.shape_cast %18 : vector<8xf32> to vector<8x1xf32>
    %20 = arith.truncf %17 : vector<8x8xf32> to vector<8x8xbf16>
    %cst_7 = arith.constant dense<0.000000e+00> : vector<8x4xf32>
    %21 = tpu.matmul %20, %11, %cst_7 {dimension_numbers = #tpu.dot_dimension_numbers<[1], [0], [0], [1], [0, 0, 1, 1], [], []>} : vector<8x8xbf16>, vector<8x4xbf16>, vector<8x4xf32> -> vector<8x4xf32>
    %22 = tpu.reciprocal %19 {approx = true} : vector<8x1xf32> -> vector<8x1xf32>
    %23 = vector.broadcast %22 : vector<8x1xf32> to vector<8x4xf32>
    %24 = arith.mulf %21, %23 : vector<8x4xf32>
    %25 = arith.truncf %24 : vector<8x4xf32> to vector<8x4xbf16>
    %26 = vector.extract_strided_slice %6 {offsets = [0, 4], sizes = [8, 4], strides = [1, 1]} : vector<8x32xbf16> to vector<8x4xbf16>
    %27 = vector.extract_strided_slice %7 {offsets = [0, 4], sizes = [8, 4], strides = [1, 1]} : vector<8x32xbf16> to vector<8x4xbf16>
    %28 = vector.extract_strided_slice %8 {offsets = [0, 4], sizes = [8, 4], strides = [1, 1]} : vector<8x32xbf16> to vector<8x4xbf16>
    %cst_8 = arith.constant dense<0.000000e+00> : vector<8x8xf32>
    %29 = tpu.matmul %26, %27, %cst_8 {dimension_numbers = #tpu.dot_dimension_numbers<[1], [1], [0], [0], [0, 0, 1, 0], [], []>} : vector<8x4xbf16>, vector<8x4xbf16>, vector<8x8xf32> -> vector<8x8xf32>
    %cst_9 = arith.constant dense<0xFF800000> : vector<8xf32>
    %30 = vector.multi_reduction <maximumf>, %29, %cst_9 [1] : vector<8x8xf32> to vector<8xf32>
    %31 = vector.shape_cast %30 : vector<8xf32> to vector<8x1xf32>
    %32 = vector.broadcast %31 : vector<8x1xf32> to vector<8x8xf32>
    %33 = arith.subf %29, %32 : vector<8x8xf32>
    %34 = math.exp %33 : vector<8x8xf32>
    %cst_10 = arith.constant dense<0.000000e+00> : vector<8xf32>
    %35 = vector.multi_reduction <add>, %34, %cst_10 [1] : vector<8x8xf32> to vector<8xf32>
    %36 = vector.shape_cast %35 : vector<8xf32> to vector<8x1xf32>
    %37 = arith.truncf %34 : vector<8x8xf32> to vector<8x8xbf16>
    %cst_11 = arith.constant dense<0.000000e+00> : vector<8x4xf32>
    %38 = tpu.matmul %37, %28, %cst_11 {dimension_numbers = #tpu.dot_dimension_numbers<[1], [0], [0], [1], [0, 0, 1, 1], [], []>} : vector<8x8xbf16>, vector<8x4xbf16>, vector<8x4xf32> -> vector<8x4xf32>
    %39 = tpu.reciprocal %36 {approx = true} : vector<8x1xf32> -> vector<8x1xf32>
    %40 = vector.broadcast %39 : vector<8x1xf32> to vector<8x4xf32>
    %41 = arith.mulf %38, %40 : vector<8x4xf32>
    %42 = arith.truncf %41 : vector<8x4xf32> to vector<8x4xbf16>
    %43 = vector.extract_strided_slice %6 {offsets = [0, 8], sizes = [8, 4], strides = [1, 1]} : vector<8x32xbf16> to vector<8x4xbf16>
    %44 = vector.extract_strided_slice %7 {offsets = [0, 8], sizes = [8, 4], strides = [1, 1]} : vector<8x32xbf16> to vector<8x4xbf16>
    %45 = vector.extract_strided_slice %8 {offsets = [0, 8], sizes = [8, 4], strides = [1, 1]} : vector<8x32xbf16> to vector<8x4xbf16>
    %cst_12 = arith.constant dense<0.000000e+00> : vector<8x8xf32>
    %46 = tpu.matmul %43, %44, %cst_12 {dimension_numbers = #tpu.dot_dimension_numbers<[1], [1], [0], [0], [0, 0, 1, 0], [], []>} : vector<8x4xbf16>, vector<8x4xbf16>, vector<8x8xf32> -> vector<8x8xf32>
    %cst_13 = arith.constant dense<0xFF800000> : vector<8xf32>
    %47 = vector.multi_reduction <maximumf>, %46, %cst_13 [1] : vector<8x8xf32> to vector<8xf32>
    %48 = vector.shape_cast %47 : vector<8xf32> to vector<8x1xf32>
    %49 = vector.broadcast %48 : vector<8x1xf32> to vector<8x8xf32>
    %50 = arith.subf %46, %49 : vector<8x8xf32>
    %51 = math.exp %50 : vector<8x8xf32>
    %cst_14 = arith.constant dense<0.000000e+00> : vector<8xf32>
    %52 = vector.multi_reduction <add>, %51, %cst_14 [1] : vector<8x8xf32> to vector<8xf32>
    %53 = vector.shape_cast %52 : vector<8xf32> to vector<8x1xf32>
    %54 = arith.truncf %51 : vector<8x8xf32> to vector<8x8xbf16>
    %cst_15 = arith.constant dense<0.000000e+00> : vector<8x4xf32>
    %55 = tpu.matmul %54, %45, %cst_15 {dimension_numbers = #tpu.dot_dimension_numbers<[1], [0], [0], [1], [0, 0, 1, 1], [], []>} : vector<8x8xbf16>, vector<8x4xbf16>, vector<8x4xf32> -> vector<8x4xf32>
    %56 = tpu.reciprocal %53 {approx = true} : vector<8x1xf32> -> vector<8x1xf32>
    %57 = vector.broadcast %56 : vector<8x1xf32> to vector<8x4xf32>
    %58 = arith.mulf %55, %57 : vector<8x4xf32>
    %59 = arith.truncf %58 : vector<8x4xf32> to vector<8x4xbf16>
    %60 = vector.extract_strided_slice %6 {offsets = [0, 12], sizes = [8, 4], strides = [1, 1]} : vector<8x32xbf16> to vector<8x4xbf16>
    %61 = vector.extract_strided_slice %7 {offsets = [0, 12], sizes = [8, 4], strides = [1, 1]} : vector<8x32xbf16> to vector<8x4xbf16>
    %62 = vector.extract_strided_slice %8 {offsets = [0, 12], sizes = [8, 4], strides = [1, 1]} : vector<8x32xbf16> to vector<8x4xbf16>
    %cst_16 = arith.constant dense<0.000000e+00> : vector<8x8xf32>
    %63 = tpu.matmul %60, %61, %cst_16 {dimension_numbers = #tpu.dot_dimension_numbers<[1], [1], [0], [0], [0, 0, 1, 0], [], []>} : vector<8x4xbf16>, vector<8x4xbf16>, vector<8x8xf32> -> vector<8x8xf32>
    %cst_17 = arith.constant dense<0xFF800000> : vector<8xf32>
    %64 = vector.multi_reduction <maximumf>, %63, %cst_17 [1] : vector<8x8xf32> to vector<8xf32>
    %65 = vector.shape_cast %64 : vector<8xf32> to vector<8x1xf32>
    %66 = vector.broadcast %65 : vector<8x1xf32> to vector<8x8xf32>
    %67 = arith.subf %63, %66 : vector<8x8xf32>
    %68 = math.exp %67 : vector<8x8xf32>
    %cst_18 = arith.constant dense<0.000000e+00> : vector<8xf32>
    %69 = vector.multi_reduction <add>, %68, %cst_18 [1] : vector<8x8xf32> to vector<8xf32>
    %70 = vector.shape_cast %69 : vector<8xf32> to vector<8x1xf32>
    %71 = arith.truncf %68 : vector<8x8xf32> to vector<8x8xbf16>
    %cst_19 = arith.constant dense<0.000000e+00> : vector<8x4xf32>
    %72 = tpu.matmul %71, %62, %cst_19 {dimension_numbers = #tpu.dot_dimension_numbers<[1], [0], [0], [1], [0, 0, 1, 1], [], []>} : vector<8x8xbf16>, vector<8x4xbf16>, vector<8x4xf32> -> vector<8x4xf32>
    %73 = tpu.reciprocal %70 {approx = true} : vector<8x1xf32> -> vector<8x1xf32>
    %74 = vector.broadcast %73 : vector<8x1xf32> to vector<8x4xf32>
    %75 = arith.mulf %72, %74 : vector<8x4xf32>
    %76 = arith.truncf %75 : vector<8x4xf32> to vector<8x4xbf16>
    %77 = vector.extract_strided_slice %6 {offsets = [0, 16], sizes = [8, 4], strides = [1, 1]} : vector<8x32xbf16> to vector<8x4xbf16>
    %78 = vector.extract_strided_slice %7 {offsets = [0, 16], sizes = [8, 4], strides = [1, 1]} : vector<8x32xbf16> to vector<8x4xbf16>
    %79 = vector.extract_strided_slice %8 {offsets = [0, 16], sizes = [8, 4], strides = [1, 1]} : vector<8x32xbf16> to vector<8x4xbf16>
    %cst_20 = arith.constant dense<0.000000e+00> : vector<8x8xf32>
    %80 = tpu.matmul %77, %78, %cst_20 {dimension_numbers = #tpu.dot_dimension_numbers<[1], [1], [0], [0], [0, 0, 1, 0], [], []>} : vector<8x4xbf16>, vector<8x4xbf16>, vector<8x8xf32> -> vector<8x8xf32>
    %cst_21 = arith.constant dense<0xFF800000> : vector<8xf32>
    %81 = vector.multi_reduction <maximumf>, %80, %cst_21 [1] : vector<8x8xf32> to vector<8xf32>
    %82 = vector.shape_cast %81 : vector<8xf32> to vector<8x1xf32>
    %83 = vector.broadcast %82 : vector<8x1xf32> to vector<8x8xf32>
    %84 = arith.subf %80, %83 : vector<8x8xf32>
    %85 = math.exp %84 : vector<8x8xf32>
    %cst_22 = arith.constant dense<0.000000e+00> : vector<8xf32>
    %86 = vector.multi_reduction <add>, %85, %cst_22 [1] : vector<8x8xf32> to vector<8xf32>
    %87 = vector.shape_cast %86 : vector<8xf32> to vector<8x1xf32>
    %88 = arith.truncf %85 : vector<8x8xf32> to vector<8x8xbf16>
    %cst_23 = arith.constant dense<0.000000e+00> : vector<8x4xf32>
    %89 = tpu.matmul %88, %79, %cst_23 {dimension_numbers = #tpu.dot_dimension_numbers<[1], [0], [0], [1], [0, 0, 1, 1], [], []>} : vector<8x8xbf16>, vector<8x4xbf16>, vector<8x4xf32> -> vector<8x4xf32>
    %90 = tpu.reciprocal %87 {approx = true} : vector<8x1xf32> -> vector<8x1xf32>
    %91 = vector.broadcast %90 : vector<8x1xf32> to vector<8x4xf32>
    %92 = arith.mulf %89, %91 : vector<8x4xf32>
    %93 = arith.truncf %92 : vector<8x4xf32> to vector<8x4xbf16>
    %94 = vector.extract_strided_slice %6 {offsets = [0, 20], sizes = [8, 4], strides = [1, 1]} : vector<8x32xbf16> to vector<8x4xbf16>
    %95 = vector.extract_strided_slice %7 {offsets = [0, 20], sizes = [8, 4], strides = [1, 1]} : vector<8x32xbf16> to vector<8x4xbf16>
    %96 = vector.extract_strided_slice %8 {offsets = [0, 20], sizes = [8, 4], strides = [1, 1]} : vector<8x32xbf16> to vector<8x4xbf16>
    %cst_24 = arith.constant dense<0.000000e+00> : vector<8x8xf32>
    %97 = tpu.matmul %94, %95, %cst_24 {dimension_numbers = #tpu.dot_dimension_numbers<[1], [1], [0], [0], [0, 0, 1, 0], [], []>} : vector<8x4xbf16>, vector<8x4xbf16>, vector<8x8xf32> -> vector<8x8xf32>
    %cst_25 = arith.constant dense<0xFF800000> : vector<8xf32>
    %98 = vector.multi_reduction <maximumf>, %97, %cst_25 [1] : vector<8x8xf32> to vector<8xf32>
    %99 = vector.shape_cast %98 : vector<8xf32> to vector<8x1xf32>
    %100 = vector.broadcast %99 : vector<8x1xf32> to vector<8x8xf32>
    %101 = arith.subf %97, %100 : vector<8x8xf32>
    %102 = math.exp %101 : vector<8x8xf32>
    %cst_26 = arith.constant dense<0.000000e+00> : vector<8xf32>
    %103 = vector.multi_reduction <add>, %102, %cst_26 [1] : vector<8x8xf32> to vector<8xf32>
    %104 = vector.shape_cast %103 : vector<8xf32> to vector<8x1xf32>
    %105 = arith.truncf %102 : vector<8x8xf32> to vector<8x8xbf16>
    %cst_27 = arith.constant dense<0.000000e+00> : vector<8x4xf32>
    %106 = tpu.matmul %105, %96, %cst_27 {dimension_numbers = #tpu.dot_dimension_numbers<[1], [0], [0], [1], [0, 0, 1, 1], [], []>} : vector<8x8xbf16>, vector<8x4xbf16>, vector<8x4xf32> -> vector<8x4xf32>
    %107 = tpu.reciprocal %104 {approx = true} : vector<8x1xf32> -> vector<8x1xf32>
    %108 = vector.broadcast %107 : vector<8x1xf32> to vector<8x4xf32>
    %109 = arith.mulf %106, %108 : vector<8x4xf32>
    %110 = arith.truncf %109 : vector<8x4xf32> to vector<8x4xbf16>
    %111 = vector.extract_strided_slice %6 {offsets = [0, 24], sizes = [8, 4], strides = [1, 1]} : vector<8x32xbf16> to vector<8x4xbf16>
    %112 = vector.extract_strided_slice %7 {offsets = [0, 24], sizes = [8, 4], strides = [1, 1]} : vector<8x32xbf16> to vector<8x4xbf16>
    %113 = vector.extract_strided_slice %8 {offsets = [0, 24], sizes = [8, 4], strides = [1, 1]} : vector<8x32xbf16> to vector<8x4xbf16>
    %cst_28 = arith.constant dense<0.000000e+00> : vector<8x8xf32>
    %114 = tpu.matmul %111, %112, %cst_28 {dimension_numbers = #tpu.dot_dimension_numbers<[1], [1], [0], [0], [0, 0, 1, 0], [], []>} : vector<8x4xbf16>, vector<8x4xbf16>, vector<8x8xf32> -> vector<8x8xf32>
    %cst_29 = arith.constant dense<0xFF800000> : vector<8xf32>
    %115 = vector.multi_reduction <maximumf>, %114, %cst_29 [1] : vector<8x8xf32> to vector<8xf32>
    %116 = vector.shape_cast %115 : vector<8xf32> to vector<8x1xf32>
    %117 = vector.broadcast %116 : vector<8x1xf32> to vector<8x8xf32>
    %118 = arith.subf %114, %117 : vector<8x8xf32>
    %119 = math.exp %118 : vector<8x8xf32>
    %cst_30 = arith.constant dense<0.000000e+00> : vector<8xf32>
    %120 = vector.multi_reduction <add>, %119, %cst_30 [1] : vector<8x8xf32> to vector<8xf32>
    %121 = vector.shape_cast %120 : vector<8xf32> to vector<8x1xf32>
    %122 = arith.truncf %119 : vector<8x8xf32> to vector<8x8xbf16>
    %cst_31 = arith.constant dense<0.000000e+00> : vector<8x4xf32>
    %123 = tpu.matmul %122, %113, %cst_31 {dimension_numbers = #tpu.dot_dimension_numbers<[1], [0], [0], [1], [0, 0, 1, 1], [], []>} : vector<8x8xbf16>, vector<8x4xbf16>, vector<8x4xf32> -> vector<8x4xf32>
    %124 = tpu.reciprocal %121 {approx = true} : vector<8x1xf32> -> vector<8x1xf32>
    %125 = vector.broadcast %124 : vector<8x1xf32> to vector<8x4xf32>
    %126 = arith.mulf %123, %125 : vector<8x4xf32>
    %127 = arith.truncf %126 : vector<8x4xf32> to vector<8x4xbf16>
    %128 = vector.extract_strided_slice %6 {offsets = [0, 28], sizes = [8, 4], strides = [1, 1]} : vector<8x32xbf16> to vector<8x4xbf16>
    %129 = vector.extract_strided_slice %7 {offsets = [0, 28], sizes = [8, 4], strides = [1, 1]} : vector<8x32xbf16> to vector<8x4xbf16>
    %130 = vector.extract_strided_slice %8 {offsets = [0, 28], sizes = [8, 4], strides = [1, 1]} : vector<8x32xbf16> to vector<8x4xbf16>
    %cst_32 = arith.constant dense<0.000000e+00> : vector<8x8xf32>
    %131 = tpu.matmul %128, %129, %cst_32 {dimension_numbers = #tpu.dot_dimension_numbers<[1], [1], [0], [0], [0, 0, 1, 0], [], []>} : vector<8x4xbf16>, vector<8x4xbf16>, vector<8x8xf32> -> vector<8x8xf32>
    %cst_33 = arith.constant dense<0xFF800000> : vector<8xf32>
    %132 = vector.multi_reduction <maximumf>, %131, %cst_33 [1] : vector<8x8xf32> to vector<8xf32>
    %133 = vector.shape_cast %132 : vector<8xf32> to vector<8x1xf32>
    %134 = vector.broadcast %133 : vector<8x1xf32> to vector<8x8xf32>
    %135 = arith.subf %131, %134 : vector<8x8xf32>
    %136 = math.exp %135 : vector<8x8xf32>
    %cst_34 = arith.constant dense<0.000000e+00> : vector<8xf32>
    %137 = vector.multi_reduction <add>, %136, %cst_34 [1] : vector<8x8xf32> to vector<8xf32>
    %138 = vector.shape_cast %137 : vector<8xf32> to vector<8x1xf32>
    %139 = arith.truncf %136 : vector<8x8xf32> to vector<8x8xbf16>
    %cst_35 = arith.constant dense<0.000000e+00> : vector<8x4xf32>
    %140 = tpu.matmul %139, %130, %cst_35 {dimension_numbers = #tpu.dot_dimension_numbers<[1], [0], [0], [1], [0, 0, 1, 1], [], []>} : vector<8x8xbf16>, vector<8x4xbf16>, vector<8x4xf32> -> vector<8x4xf32>
    %141 = tpu.reciprocal %138 {approx = true} : vector<8x1xf32> -> vector<8x1xf32>
    %142 = vector.broadcast %141 : vector<8x1xf32> to vector<8x4xf32>
    %143 = arith.mulf %140, %142 : vector<8x4xf32>
    %144 = arith.truncf %143 : vector<8x4xf32> to vector<8x4xbf16>
    %145 = tpu.concatenate %25, %42, %59, %76, %93, %110, %127, %144 in 1 : vector<8x4xbf16>, vector<8x4xbf16>, vector<8x4xbf16>, vector<8x4xbf16>, vector<8x4xbf16>, vector<8x4xbf16>, vector<8x4xbf16>, vector<8x4xbf16> -> vector<8x32xbf16>
    %c0_36 = arith.constant 0 : index
    %c0_37 = arith.constant 0 : index
    %146 = vector.load %arg4[%c0_36, %c0_37] : memref<32x32xbf16, #tpu.memory_space<vmem>>, vector<32x32xbf16>
    %cst_38 = arith.constant dense<0.000000e+00> : vector<8x32xf32>
    %147 = tpu.matmul %145, %146, %cst_38 {dimension_numbers = #tpu.dot_dimension_numbers<[1], [0], [0], [1], [0, 0, 1, 1], [], []>} : vector<8x32xbf16>, vector<32x32xbf16>, vector<8x32xf32> -> vector<8x32xf32>
    %c0_39 = arith.constant 0 : index
    %c0_40 = arith.constant 0 : index
    %148 = vector.load %arg5[%c0_39, %c0_40] : memref<1x32xf32, #tpu.memory_space<vmem>>, vector<1x32xf32>
    %149 = vector.broadcast %148 : vector<1x32xf32> to vector<8x32xf32>
    %150 = arith.addf %147, %149 : vector<8x32xf32>
    %c0_41 = arith.constant 0 : index
    %c0_42 = arith.constant 0 : index
    %c0_43 = arith.constant 0 : index
    %151 = vector.load %arg6[%c0_41, %c0_42, %c0_43] : memref<1x8x32xf32, #tpu.memory_space<vmem>>, vector<1x8x32xf32>
    %152 = vector.shape_cast %151 : vector<1x8x32xf32> to vector<8x32xf32>
    %153 = vector.shape_cast %150 : vector<8x32xf32> to vector<1x8x32xf32>
    tpu.vector_store %arg6[%c0_41, %c0_42, %c0_43], %153 {strides = array<i32>} : memref<1x8x32xf32, #tpu.memory_space<vmem>>, vector<1x8x32xf32>,
    return
  }
  func.func @transform_0(%arg0: i32, %arg1: i32) -> (i32, i32, i32) {
    %c0_i32 = arith.constant 0 : i32
    %c0_i32_0 = arith.constant 0 : i32
    %c0_i32_1 = arith.constant 0 : i32
    return %arg0, %c0_i32, %c0_i32_0 : i32, i32, i32
  }
  func.func @transform_1(%arg0: i32, %arg1: i32) -> (i32, i32) {
    %c0_i32 = arith.constant 0 : i32
    %c0_i32_0 = arith.constant 0 : i32
    %c0_i32_1 = arith.constant 0 : i32
    return %c0_i32, %c0_i32_0 : i32, i32
  }
  func.func @transform_2(%arg0: i32, %arg1: i32) -> (i32, i32) {
    %c0_i32 = arith.constant 0 : i32
    %c0_i32_0 = arith.constant 0 : i32
    %c0_i32_1 = arith.constant 0 : i32
    return %c0_i32, %c0_i32_0 : i32, i32
  }
  func.func @transform_3(%arg0: i32, %arg1: i32) -> (i32, i32) {
    %c0_i32 = arith.constant 0 : i32
    %c0_i32_0 = arith.constant 0 : i32
    %c0_i32_1 = arith.constant 0 : i32
    return %c0_i32, %c0_i32_0 : i32, i32
  }
  func.func @transform_4(%arg0: i32, %arg1: i32) -> (i32, i32, i32) {
    %c0_i32 = arith.constant 0 : i32
    %c0_i32_0 = arith.constant 0 : i32
    return %arg0, %arg1, %c0_i32 : i32, i32, i32
  }
}

</mosaic_0001>

<bundles_post_ra>
// kernel: tpu_custom_call.1
= control target key start
LH: loop header
LB: loop body
LE: loop exit
PB: predicated region body
PF: predicated region fallthrough
CT: control target
= control target key end

     0   :  { %9 = vsyncpa [#allocation6], 0  ;;  %s2369_s0 = inlined_call_operand.hbm [shape: bf16[2,8,32], index: 0, kind: input, shape index: {}]   ;;  %s2370_s1 = inlined_call_operand.hbm [shape: bf16[32,96], index: 1, kind: input, shape index: {}]   ;;  %s2371_s2 = inlined_call_operand.hbm [shape: bf16[32,32], index: 2, kind: input, shape index: {}]   ;;  %s2372_s3 = inlined_call_operand.vmem [shape: f32[1,32], index: 3, kind: input, shape index: {}]   ;;  %s2373_s4 = inlined_call_operand.hbm [shape: f32[2,8,32], index: 4, kind: output, shape index: {}]  }
   0x1   :  { %11 = vsyncpa [#allocation6 + $0x1], 0 }
   0x2   :  { %12 = vsyncpa [#allocation9], 0 }
   0x3   :  { %13 = vsyncpa [#allocation7], 0 }
   0x4   :  { %15 = vsyncpa [#allocation7 + $0x1], 0  ;;  %s2013_s15 = smov 0   ;;  %s2015_s16 = smov 0  }
   0x5   :  { %s2017_s17 = smov 0   ;;  %s2019_s18 = smov 0  }
   0x6   :  { %s2021_s19 = smov 0   ;;  %s2023_s20 = smov 0  }
   0x7 LB: > { %s1461_s21 = sadd.s32 4294967295, %s1962_s20   ;;  %s1462_s22 = sadd.s32 4294967294, %s1962_s20   ;;  %s1962_s20 = sphi %s2023_s20, %s21_s20   ;;  %s1958_s19 = sphi %s2021_s19, %s2393_s19   ;;  %s1954_s18 = sphi %s2019_s18, %s2392_s18   ;;  %s1950_s17 = sphi %s2017_s17, %s2391_s17   ;;  %s1946_s16 = sphi %s2015_s16, %s2390_s16   ;;  %s1942_s15 = sphi %s2013_s15, %s2389_s15  }
   0x8   : > { %p53_p0 = scmp.ne.s32.totalorder %s1946_s16, %s1942_s15  ;;  %p2047_p1 = scmp.eq.s32.totalorder %s1461_s21, 0 }
   0x9   : > { %p2051_p2 = scmp.eq.s32.totalorder %s1461_s21, 1  ;;  %p148_p3 = scmp.eq.s32.totalorder %s1462_s22, 1 }
   0xa   : > { %s2377_s23 = scalar_select %p2047_p1, 1, 0 }
   0xb   : > { %p2057_p4 = por %p2047_p1, %p53_p0  ;;  %p1463_p5 = scmp.ge.s32.totalorder %s1962_s20, 1 }
   0xc   : > { %p2062_p6 = por %p148_p3, %p53_p0  ;;  %p155_p7 = scmp.lt.s32.totalorder %s1962_s20, 3 }
   0xd   : > { %s2379_s25 = scalar_select %p2057_p4, 1, 0 }
   0xe   : > { %s2380_s26 = scalar_select %p2062_p6, 1, 0 }
   0xf   : > { %p2067_p8 = pnand %p1463_p5, %p155_p7  ;;  %s1964_s28 = smov [#allocation8]  }
  0x10   : > { %s167_s29 = sshll.u32 %s1964_s28, 4  ;;  %s1965_s5 = smov [#allocation10]   ;;  %s168_s29 = int_to_ptr.vmem [resolvable:$true] %s167_s29 }
  0x11   : > { %p1668_p9 = pneg %p2067_p8  ;;  %s180_s6 = sshll.u32 %s1965_s5, 4  ;;  %s181_s6 = int_to_ptr.vmem [resolvable:$true] %s180_s6 }
  0x12   : > { %s1809_s7 = scalar_lea.vmem %s168_s29, 256  ;;  %p1817_p5 = scmp.lt.s32.totalorder %s168_s29, %s168_s29 }
  0x13   : > { %p2076_p11 = pnand %p1668_p9, %p2047_p1  ;;  %p1810_p13 = scmp.ne.s32.totalorder %s168_s29, %s1809_s7 }
  0x14   : > { %p1818_p7 = scmp.lt.s32.totalorder %s1809_s7, %s1809_s7 }
  0x15   : > { %p1800_p12 = pneg %p2076_p11 }
  0x16   : > { %p1819_p10 = por %p1818_p7, %p1817_p5 }
  0x17   : > { %p1812_p0 = pnand %p1810_p13, %p1800_p12 }
  0x19   : > { %p1813_p3 = pneg %p1812_p0 }
  0x1b   : > { %p1820_p9 = pnand %p1819_p10, %p1813_p3 }
  0x1d   : > { %1823 = shalt.err (!%p1820_p9)
}
  0x1e   : > { %s1966_s8 = smov 64   ;;  %s1967_s9 = smov 4  }
  0x1f   : > { %1671 = dma.hbm_to_vmem [thread:$0]  (!%p2076_p11), %s2370_s1, 256, %s168_s29, [#allocation9], %s1966_s8, %s1966_s8, %s1967_s9  }
  0x20   : > { %s1835_s12 = scalar_lea.vmem %s181_s6, 256  ;;  %p1843_p1 = scmp.lt.s32.totalorder %s181_s6, %s181_s6 }
  0x21   : > { %p1836_p6 = scmp.ne.s32.totalorder %s181_s6, %s1835_s12  ;;  %p1844_p4 = scmp.lt.s32.totalorder %s1835_s12, %s1835_s12 }
  0x23   : > { %p1838_p13 = pnand %p1836_p6, %p1800_p12  ;;  %p1845_p5 = por %p1844_p4, %p1843_p1 }
  0x25   : > { %p1839_p0 = pneg %p1838_p13 }
  0x27   : > { %p1846_p10 = pnand %p1845_p5, %p1839_p0 }
  0x29   : > { %1849 = shalt.err (!%p1846_p10)
}
  0x2a   : > { %1674 = dma.hbm_to_vmem [thread:$0]  (!%p2076_p11), %s2371_s2, 256, %s181_s6, [#allocation9], %s1966_s8, %s1966_s8, %s1967_s9  }
  0x2b   : > { %s33_s21 = sadd.s32 1, %s1958_s19  ;;  %s40_s22 = sadd.s32 1, %s1950_s17 }
  0x2c   : > { %p35_p1 = scmp.ge.s32.totalorder %s33_s21, 2  ;;  %p47_p4 = scmp.ne.s32.totalorder %s1950_s17, %s1946_s16 }
  0x2d   : > { %p48_p6 = scmp.eq.s32.totalorder %s1962_s20, 0  ;;  %p1685_p12 = scmp.lt.s32.totalorder %s1962_s20, 2 }
  0x2e   : > { %s2395_s21 = smov (%p35_p1, %s33_s21), 0  ;;  %p2108_p7 = por %p2051_p2, %p47_p4 }
  0x2f   : > { %p49_p3 = por %p48_p6, %p47_p4  ;;  %s37_s29 = ssub.s32 %s1958_s19, %s2395_s21 }
  0x30   : > { %s197_s30 = sand.u32 1, %s1950_s17   ;;  %p38_p9 = scmp.eq.s32.totalorder %s37_s29, 0 }
  0x31   : > { %s1467_s5 = sshll.u32 %s197_s30, 2  ;;  %s1468_s6 = sshll.u32 %s1958_s19, 6 }
  0x32   : > { %s2117_s7 = scalar_select %p38_p9, %s1950_s17, %s40_s22  }
  0x33   : > { %s206_s10 = scalar_lea.hbm %s2369_s0, %s1468_s6  ;;  %s201_s11 = scalar_lea.vmem [#allocation5], %s1467_s5 }
  0x34   : > { %s208_s12 = sshll.u32 %s201_s11, 4  ;;  %p2124_p11 = pnand %p1685_p12, %p49_p3  ;;  %s209_s12 = int_to_ptr.vmem [resolvable:$true] %s208_s12 }
  0x35   : > { %s198_s13 = scalar_lea.sflag [#allocation6], %s197_s30  ;;  %s1863_s14 = scalar_lea.vmem %s209_s12, 64 }
  0x36   : > { %p1852_p2 = pneg %p2124_p11  ;;  %p1864_p13 = scmp.ne.s32.totalorder %s209_s12, %s1863_s14 }
  0x37   : > { %s1968_s22 = smov [#allocation5]  }
  0x38   : > { %p1866_p0 = pnand %p1864_p13, %p1852_p2  ;;  %s1868_s29 = sshll.u32 %s1968_s22, 4  ;;  %s1869_s29 = int_to_ptr.vmem [resolvable:$false] %s1868_s29 }
  0x39   : > { %s1870_s6 = scalar_lea.vmem %s1869_s29, 128  ;;  %p1871_p10 = scmp.lt.s32.totalorder %s209_s12, %s1869_s29 }
  0x3a   : > { %p1867_p5 = pneg %p1866_p0  ;;  %p1872_p1 = scmp.lt.s32.totalorder %s1870_s6, %s1863_s14 }
  0x3c   : > { %p1873_p4 = por %p1872_p1, %p1871_p10 }
  0x3e   : > { %p1874_p6 = pnand %p1873_p4, %p1867_p5 }
  0x40   : > { %1877 = shalt.err (!%p1874_p6)
}
  0x41   : > { %1678 = dma.hbm_to_vmem [thread:$0]  (!%p2124_p11), %s206_s10, 64, %s209_s12, %s198_s13  }
  0x42   : > { %217 = sbr.rel (%p2067_p8) target bundleno = 1479 (0x5c7), region = 36  ;;  %s2135_s30 = sand.u32 (!%p2067_p8), 1, %s1946_s16  }
  0x43   : > { %s1470_s5 = sshll.u32 (!%p2067_p8), %s2135_s30, 2  ;;  %s220_s8 = scalar_lea.sflag (!%p2067_p8), [#allocation6], %s2135_s30 }
  0x44   : > { %s223_s9 = scalar_lea.vmem (!%p2067_p8), [#allocation5], %s1470_s5  ;;  %p2385_p12 = scmp.ne.s32.totalorder (!%p2067_p8), %s2379_s25, 0 }
  0x47   : > { %1929 = dma.done.wait (%p2385_p12), %s220_s8, 64  }
  0x48   : > { %1931 = vsyncadd (%p2385_p12), %s220_s8, 4294967232  ;;  %p2386_p3 = scmp.ne.s32.totalorder %s2377_s23, 0 }
  0x4a   : > { %1933 = dma.done.wait (%p2386_p3), [#allocation9], 512  }
  0x4b   : > { %1935 = vsyncadd (%p2386_p3), [#allocation9], 4294966784  ;;  %v1969_v0 = vmov 0.0   ;;  %vm1970_vm0 = vmmov 0   ;;  %v1759_v1 = vld [vmem:[#allocation8 + $0x8] sm:$0xff]   ;;  %v1760_v2 = vld [vmem:[#allocation8] sm:$0xff]  }
  0x4c   : > { %1544 = vmatprep.subr.bf16.mxu0 %v1969_v0  ;;  %1548 = vmatprep.mubr.msk.bf16.mxu0 %vm1970_vm0, %v1969_v0  ;;  %v261_v3 = vld [vmem:[%s223_s9] sm:$0xf]  ;;  %vm278_vm1 = vcmask 261120   ;;  %vm323_vm2 = vcmask 257024   ;;  %s1971_s23 = smov 96   ;;  %s1972_s25 = smov 124  }
  0x4d   : > { %1552 = vmatprep.subr.bf16.mxu1 %v1969_v0  ;;  %1554 = vmatprep.mubr.msk.bf16.mxu1 %vm1970_vm0, %v1969_v0  ;;  %vm344_vm3 = vcmask 31744   ;;  %s1973_s27 = smov 120   ;;  %s1974_s10 = smov 116   ;;  %vm405_vm4 = vcmask 1043456   ;;  %vm391_vm5 = vcmask 64512   ;;  %vm1264_vm6 = vcmask 97280  }
  0x4e   : > { %1545 = vmatpush3.bf16.msra.mxu0 %v1759_v1  ;;  %s1975_s11 = smov 112   ;;  %s1976_s12 = smov 108   ;;  %vm1267_vm7 = vcmask 130048   ;;  %vm1270_vm8 = vcmask 162816   ;;  %vm1273_vm9 = vcmask 195584   ;;  %vm1276_vm10 = vcmask 228352  }
  0x4f   : > { %1546 = vmatprep.subr.bf16.mxu0 %v1969_v0  ;;  %s1977_s24 = smov 104   ;;  %s1978_s13 = smov 100  }
  0x50   : > { %s1979_s14 = smov 64   ;;  %s1980_s22 = smov 4  }
  0x51   : > { %s1981_s29 = smov 8   ;;  %s1982_s6 = smov 12  }
  0x52   : > { %1547 = vmatpush3.bf16.msra.mxu0 %v1760_v2  ;;  %s1983_s5 = smov 16   ;;  %s1984_s8 = smov 20  }
  0x53   : > { %1558 = vmatprep.subr.bf16.mxu0 %v1969_v0  ;;  %s1985_s9 = smov 24  }
  0x55   : > { %1549 = vmatmul.mubr.msk.bf16.vlgmr.msra.gmra.mxu0 %vm278_vm1, %v261_v3 }
  0x56   : > { %1560 = vmatprep.mubr.msk.bf16.mxu0 %vm1970_vm0, %v1969_v0 }
 0x115   : > { %v316_v4 = vpop.f32.mrf.mxu0 }
 0x116   : > { %v322_v5 = vpack.c.bf16 %v316_v4, %v316_v4 }
 0x117   : > { %v1550_v6 = vpop.f32.mrf.mxu0 }
 0x118   : > { %324 = vst.msk [vmem:[#allocation2] sm:$0xf] %vm323_vm2, %v322_v5  ;;  %328 = vrot.lane.b32.xlu0 %v322_v5, %s1971_s23  ;;  %s1986_s23 = smov 28  }
 0x119   : > { %v319_v7 = vpop.f32.mrf.mxu0 }
 0x11b   : > { %v1551_v8 = vpop.f32.mrf.mxu0 }
 0x11f   : > { %v341_v9 = vld [vmem:[#allocation2] sm:$0xf] }
 0x120   : > { %v1480_v10 = vcombine.low %v341_v9, %v341_v9 }
 0x122   : > { %455 = vrot.lane.b32.xlu1 %v1480_v10, %s1972_s25 }
 0x18a   : > { %v329_v11 = vpop.permute.xlu0 %328 }
 0x18b   : > { %331 = vst.msk [vmem:[#allocation3] sm:$0xf] %vm323_vm2, %v329_v11 }
 0x192   : > { %v342_v12 = vld [vmem:[#allocation3] sm:$0xf] }
 0x193   : > { %v349_v13 = vsel %vm344_vm3, %v342_v12, 0  ;;  %v1481_v14 = vcombine.low %v342_v12, %v342_v12 }
 0x194   : > { %1553 = vmatpush3.bf16.xpose.msra.mxu1 %v349_v13  ;;  %v456_v15 = vpop.permute.xlu1 %455 }
 0x195   : > { %460 = vrot.lane.b32.xlu0 %v1481_v14, %s1972_s25  ;;  %574 = vrot.lane.b32.xlu1 %v1481_v14, %s1973_s27 }
 0x196   : > { %1564 = vmatprep.subr.bf16.mxu1 %v1969_v0 }
 0x199   : > { %572 = vrot.lane.b32.xlu0 %v1480_v10, %s1973_s27  ;;  %685 = vrot.lane.b32.xlu1 %v1481_v14, %s1974_s10 }
 0x19b   : > { %1555 = vmatmul.mubr.msk.bf16.vlgmr.msra.gmra.mxu1 %vm344_vm3, %v341_v9 }
 0x19c   : > { %1566 = vmatprep.mubr.msk.bf16.mxu1 %vm1970_vm0, %v1969_v0 }
 0x19d   : > { %683 = vrot.lane.b32.xlu0 %v1480_v10, %s1974_s10  ;;  %796 = vrot.lane.b32.xlu1 %v1481_v14, %s1975_s11 }
 0x1a1   : > { %794 = vrot.lane.b32.xlu0 %v1480_v10, %s1975_s11  ;;  %907 = vrot.lane.b32.xlu1 %v1481_v14, %s1976_s12 }
 0x1a5   : > { %905 = vrot.lane.b32.xlu0 %v1480_v10, %s1976_s12  ;;  %1018 = vrot.lane.b32.xlu1 %v1481_v14, %s1977_s24 }
 0x1a9   : > { %1016 = vrot.lane.b32.xlu0 %v1480_v10, %s1977_s24  ;;  %1129 = vrot.lane.b32.xlu1 %v1481_v14, %s1978_s13 }
 0x1ad   : > { %1127 = vrot.lane.b32.xlu0 %v1480_v10, %s1978_s13  ;;  %332 = vrot.lane.b32.xlu1 %v322_v5, %s1979_s14 }
 0x207   : > { %v461_v16 = vpop.permute.xlu0 %460  ;;  %v575_v17 = vpop.permute.xlu1 %574 }
 0x208   : > { %v466_v18 = vsel %vm344_vm3, %v461_v16, 0  ;;  %v580_v21 = vsel %vm344_vm3, %v575_v17, 0 }
 0x209   : > { %1565 = vmatpush3.bf16.xpose.msra.mxu1 %v466_v18 }
 0x20a   : > { %1576 = vmatprep.subr.bf16.mxu1 %v1969_v0 }
 0x20b   : > { %v686_v19 = vpop.permute.xlu1 %685  ;;  %v573_v23 = vpop.permute.xlu0 %572 }
 0x20c   : > { %v691_v25 = vsel %vm344_vm3, %v686_v19, 0 }
 0x20f   : > { %v797_v20 = vpop.permute.xlu1 %796  ;;  %v684_v27 = vpop.permute.xlu0 %683 }
 0x210   : > { %1567 = vmatmul.mubr.msk.bf16.vlgmr.msra.gmra.mxu1 %vm344_vm3, %v456_v15  ;;  %v802_v29 = vsel %vm344_vm3, %v797_v20, 0 }
 0x211   : > { %1577 = vmatpush3.bf16.xpose.msra.mxu1 %v580_v21  ;;  %1578 = vmatprep.mubr.msk.bf16.mxu1 %vm1970_vm0, %v1969_v0 }
 0x212   : > { %1588 = vmatprep.subr.bf16.mxu1 %v1969_v0 }
 0x213   : > { %v908_v22 = vpop.permute.xlu1 %907  ;;  %v795_v30 = vpop.permute.xlu0 %794 }
 0x214   : > { %v913_v32 = vsel %vm344_vm3, %v908_v22, 0 }
 0x217   : > { %v1019_v24 = vpop.permute.xlu1 %1018  ;;  %v906_v35 = vpop.permute.xlu0 %905 }
 0x218   : > { %1579 = vmatmul.mubr.msk.bf16.vlgmr.msra.gmra.mxu1 %vm344_vm3, %v573_v23  ;;  %v1024_v36 = vsel %vm344_vm3, %v1019_v24, 0 }
 0x219   : > { %1589 = vmatpush3.bf16.xpose.msra.mxu1 %v691_v25  ;;  %1590 = vmatprep.mubr.msk.bf16.mxu1 %vm1970_vm0, %v1969_v0 }
 0x21a   : > { %1600 = vmatprep.subr.bf16.mxu1 %v1969_v0 }
 0x21b   : > { %v1130_v26 = vpop.permute.xlu1 %1129  ;;  %v1017_v37 = vpop.permute.xlu0 %1016 }
 0x21c   : > { %v1135_v38 = vsel %vm344_vm3, %v1130_v26, 0 }
 0x21f   : > { %v333_v28 = vpop.permute.xlu1 %332  ;;  %v1128_v39 = vpop.permute.xlu0 %1127 }
 0x220   : > { %335 = vst.msk [vmem:[#allocation4] sm:$0xf] %vm323_vm2, %v333_v28  ;;  %1591 = vmatmul.mubr.msk.bf16.vlgmr.msra.gmra.mxu1 %vm344_vm3, %v684_v27 }
 0x221   : > { %1601 = vmatpush3.bf16.xpose.msra.mxu1 %v802_v29  ;;  %1602 = vmatprep.mubr.msk.bf16.mxu1 %vm1970_vm0, %v1969_v0 }
 0x222   : > { %1612 = vmatprep.subr.bf16.mxu1 %v1969_v0 }
 0x227   : > { %v343_v31 = vld [vmem:[#allocation4] sm:$0xf] }
 0x228   : > { %1603 = vmatmul.mubr.msk.bf16.vlgmr.msra.gmra.mxu1 %vm344_vm3, %v795_v30  ;;  %v407_v33 = vsel %vm405_vm4, %v343_v31, 0  ;;  %v2200_v34 = vcombine.low %v343_v31, %v343_v31 }
 0x229   : > { %1559 = vmatpush3.bf16.msra.mxu0 %v407_v33  ;;  %1613 = vmatpush3.bf16.xpose.msra.mxu1 %v913_v32 }
 0x22a   : > { %632 = vrot.lane.b32.xlu1 %v2200_v34, %s1973_s27  ;;  %521 = vrot.lane.b32.xlu0 %v2200_v34, %s1972_s25  ;;  %s1473_s25 = sshll.u32 %s2135_s30, 3 }
 0x22b   : > { %1614 = vmatprep.mubr.msk.bf16.mxu1 %vm1970_vm0, %v1969_v0  ;;  %1624 = vmatprep.subr.bf16.mxu1 %v1969_v0 }
 0x22c   : > { %1570 = vmatprep.subr.bf16.mxu0 %v1969_v0 }
 0x230   : > { %1615 = vmatmul.mubr.msk.bf16.vlgmr.msra.gmra.mxu1 %vm344_vm3, %v906_v35 }
 0x231   : > { %1625 = vmatpush3.bf16.xpose.msra.mxu1 %v1024_v36  ;;  %1626 = vmatprep.mubr.msk.bf16.mxu1 %vm1970_vm0, %v1969_v0 }
 0x232   : > { %1636 = vmatprep.subr.bf16.mxu1 %v1969_v0 }
 0x238   : > { %1627 = vmatmul.mubr.msk.bf16.vlgmr.msra.gmra.mxu1 %vm344_vm3, %v1017_v37 }
 0x239   : > { %1637 = vmatpush3.bf16.xpose.msra.mxu1 %v1135_v38  ;;  %1638 = vmatprep.mubr.msk.bf16.mxu1 %vm1970_vm0, %v1969_v0 }
 0x23a   : > { %1648 = vmatprep.subr.bf16.mxu1 %v1969_v0 }
 0x240   : > { %1639 = vmatmul.mubr.msk.bf16.vlgmr.msra.gmra.mxu1 %vm344_vm3, %v1128_v39 }
 0x241   : > { %1652 = vmatprep.mubr.msk.bf16.mxu1 %vm1970_vm0, %v1969_v0 }
 0x25b   : > { %v385_v40 = vpop.f32.mrf.mxu1 }
 0x25c   : > { %v392_v41 = vsel %vm391_vm5, %v385_v40, -inf }
 0x25d   : > { %393 = vmax.xlane.f32.xlu0 %v392_v41  ;;  %v1556_v42 = vpop.f32.mrf.mxu1 }
 0x25f   : > { %v388_v43 = vpop.f32.mrf.mxu1 }
 0x261   : > { %v1557_v44 = vpop.f32.mrf.mxu1 }
 0x29c   : > { %v522_v57 = vpop.permute.xlu0 %521  ;;  %v633_v24 = vpop.permute.xlu1 %632 }
 0x29d   : > { %v527_v13 = vsel %vm405_vm4, %v522_v57, 0  ;;  %v638_v38 = vsel %vm405_vm4, %v633_v24, 0 }
 0x2d0   : > { %v502_v45 = vpop.f32.mrf.mxu1 }
 0x2d1   : > { %v508_v46 = vsel %vm391_vm5, %v502_v45, -inf }
 0x2d2   : > { %509 = vmax.xlane.f32.xlu1 %v508_v46  ;;  %v1568_v47 = vpop.f32.mrf.mxu1 }
 0x2d4   : > { %v505_v48 = vpop.f32.mrf.mxu1 }
 0x2d6   : > { %v1569_v49 = vpop.f32.mrf.mxu1 }
 0x2d8   : > { %v616_v50 = vpop.f32.mrf.mxu1 }
 0x2d9   : > { %v622_v51 = vsel %vm391_vm5, %v616_v50, -inf }
 0x2da   : > { %623 = vmax.xlane.f32.xlu0 %v622_v51  ;;  %v1580_v52 = vpop.f32.mrf.mxu1 }
 0x2dc   : > { %v619_v53 = vpop.f32.mrf.mxu1 }
 0x2de   : > { %v1581_v54 = vpop.f32.mrf.mxu1 }
 0x2e0   : > { %v727_v55 = vpop.f32.mrf.mxu1 }
 0x2e1   : > { %v733_v56 = vsel %vm391_vm5, %v727_v55, -inf }
 0x2e2   : > { %734 = vmax.xlane.f32.xlu0 %v733_v56  ;;  %v1592_v58 = vpop.f32.mrf.mxu1 }
 0x2e3   : > { %743 = vrot.lane.b32.xlu1 %v2200_v34, %s1974_s10 }
 0x2e4   : > { %v730_v59 = vpop.f32.mrf.mxu1 }
 0x2e6   : > { %v394_v60 = vpop.xlane.xlu0 %393  ;;  %v1593_v61 = vpop.f32.mrf.mxu1 }
 0x2e7   : > { %v395_v62 = vsub.f32 %v385_v40, %v394_v60 }
 0x2e8   : > { %v2229_v63 = vpop.f32.mrf.mxu1 }
 0x2e9   : > { %v396_v1 = vmul.f32 1.442695, %v395_v62  ;;  %v844_v20 = vsel %vm391_vm5, %v2229_v63, -inf }
 0x2ea   : > { %v1604_v2 = vpop.f32.mrf.mxu1 }
 0x2eb   : > { %1766 = vpow2.f32 %v396_v1 }
 0x2ec   : > { %v841_v3 = vpop.f32.mrf.mxu1 }
 0x2ee   : > { %v1605_v4 = vpop.f32.mrf.mxu1 }
 0x2f0   : > { %v2231_v5 = vpop.f32.mrf.mxu1 }
 0x2f1   : > { %v955_v21 = vsel %vm391_vm5, %v2231_v5, -inf }
 0x2f2   : > { %v1616_v6 = vpop.f32.mrf.mxu1 }
 0x2f4   : > { %v952_v7 = vpop.f32.mrf.mxu1 }
 0x2f6   : > { %v1617_v8 = vpop.f32.mrf.mxu1 }
 0x2f8   : > { %v2233_v9 = vpop.eup %1766  ;;  %854 = vrot.lane.b32.xlu0 %v2200_v34, %s1975_s11  ;;  %v2237_v10 = vpop.f32.mrf.mxu1  ;;  %s1502_s11 = sshll.u32 %s1954_s18, 7 }
 0x2f9   : > { %v401_v11 = vpack.c.bf16 %v2233_v9, %v2233_v9  ;;  %v1066_v23 = vsel %vm391_vm5, %v2237_v10, -inf }
 0x2fa   : > { %v1628_v12 = vpop.f32.mrf.mxu1 }
 0x2fb   : > { %1561 = vmatmul.mubr.msk.bf16.vlgmr.msra.gmra.mxu0 %vm391_vm5, %v401_v11 }
 0x2fc   : > { %1571 = vmatpush3.bf16.msra.mxu0 %v527_v13  ;;  %v1063_v14 = vpop.f32.mrf.mxu1  ;;  %1572 = vmatprep.mubr.msk.bf16.mxu0 %vm1970_vm0, %v1969_v0 }
 0x2fd   : > { %1582 = vmatprep.subr.bf16.mxu0 %v1969_v0 }
 0x2fe   : > { %v1629_v15 = vpop.f32.mrf.mxu1 }
 0x2ff   : > { %v398_v15 = vsel %vm391_vm5, %v2233_v9, 0.0 }
 0x300   : > { %v2246_v16 = vpop.f32.mrf.mxu1 }
 0x301   : > { %v1177_v22 = vsel %vm391_vm5, %v2246_v16, -inf }
 0x302   : > { %v1640_v17 = vpop.f32.mrf.mxu1 }
 0x304   : > { %v1174_v18 = vpop.f32.mrf.mxu1 }
 0x306   : > { %v1641_v19 = vpop.f32.mrf.mxu1 }
 0x307   : > { %845 = vmax.xlane.f32.xlu1 %v844_v20 }
 0x30b   : > { %956 = vmax.xlane.f32.xlu1 %v955_v21 }
 0x30f   : > { %1178 = vmax.xlane.f32.xlu1 %v1177_v22 }
 0x317   : > { %1067 = vmax.xlane.f32.xlu0 %v1066_v23 }
 0x320   : > { %965 = vrot.lane.b32.xlu1 %v2200_v34, %s1976_s12  ;;  %s255_s12 = scalar_lea.vmem [#allocation11], %s1473_s25 }
 0x32d   : > { %1076 = vrot.lane.b32.xlu0 %v2200_v34, %s1977_s24  ;;  %s1361_s24 = sshll.u32 %s255_s12, 4  ;;  %s2322_s24 = int_to_ptr.vmem [resolvable:$true] %s1361_s24 }
 0x32e   : > { %s1878_s18 = scalar_lea.vmem %s2322_s24, 128 }
 0x32f   : > { %p1879_p8 = scmp.ne.s32.totalorder %s2322_s24, %s1878_s18 }
 0x331   : > { %1187 = vrot.lane.b32.xlu0 %v2200_v34, %s1978_s13  ;;  %p1880_p9 = pnand %p1879_p8, %p2108_p7 }
 0x333   : > { %p1881_p11 = pneg %p1880_p9 }
 0x35b   : > { %v510_v25 = vpop.xlane.xlu1 %509 }
 0x35c   : > { %v511_v26 = vsub.f32 %v502_v45, %v510_v25 }
 0x35e   : > { %v512_v27 = vmul.f32 1.442695, %v511_v26 }
 0x35f   : > { %v744_v39 = vpop.permute.xlu1 %743 }
 0x360   : > { %1768 = vpow2.f32 %v512_v27  ;;  %v749_v42 = vsel %vm405_vm4, %v744_v39, 0 }
 0x363   : > { %v624_v28 = vpop.xlane.xlu0 %623 }
 0x364   : > { %v625_v29 = vsub.f32 %v616_v50, %v624_v28 }
 0x366   : > { %v626_v30 = vmul.f32 1.442695, %v625_v29 }
 0x368   : > { %1770 = vpow2.f32 %v626_v30 }
 0x36b   : > { %v735_v31 = vpop.xlane.xlu0 %734 }
 0x36c   : > { %v736_v32 = vsub.f32 %v727_v55, %v735_v31 }
 0x36d   : > { %v1769_v33 = vpop.eup %1768 }
 0x36e   : > { %v737_v35 = vmul.f32 1.442695, %v736_v32  ;;  %v514_v36 = vsel %vm391_vm5, %v1769_v33, 0.0  ;;  %v517_v37 = vpack.c.bf16 %v1769_v33, %v1769_v33 }
 0x36f   : > { %515 = vadd.xlane.f32.xlu1 %v514_v36  ;;  %v855_v44 = vpop.permute.xlu0 %854 }
 0x370   : > { %1772 = vpow2.f32 %v737_v35  ;;  %1573 = vmatmul.mubr.msk.bf16.vlgmr.msra.gmra.mxu0 %vm391_vm5, %v517_v37  ;;  %v860_v47 = vsel %vm405_vm4, %v855_v44, 0 }
 0x371   : > { %1583 = vmatpush3.bf16.msra.mxu0 %v638_v38  ;;  %1584 = vmatprep.mubr.msk.bf16.mxu0 %vm1970_vm0, %v1969_v0 }
 0x372   : > { %1594 = vmatprep.subr.bf16.mxu0 %v1969_v0 }
 0x375   : > { %v1771_v34 = vpop.eup %1770 }
 0x376   : > { %v628_v40 = vsel %vm391_vm5, %v1771_v34, 0.0  ;;  %v631_v41 = vpack.c.bf16 %v1771_v34, %v1771_v34 }
 0x377   : > { %629 = vadd.xlane.f32.xlu0 %v628_v40 }
 0x378   : > { %1585 = vmatmul.mubr.msk.bf16.vlgmr.msra.gmra.mxu0 %vm391_vm5, %v631_v41 }
 0x379   : > { %1595 = vmatpush3.bf16.msra.mxu0 %v749_v42  ;;  %1596 = vmatprep.mubr.msk.bf16.mxu0 %vm1970_vm0, %v1969_v0 }
 0x37a   : > { %1606 = vmatprep.subr.bf16.mxu0 %v1969_v0 }
 0x37d   : > { %v1773_v43 = vpop.eup %1772 }
 0x37e   : > { %v739_v45 = vsel %vm391_vm5, %v1773_v43, 0.0  ;;  %v742_v46 = vpack.c.bf16 %v1773_v43, %v1773_v43 }
 0x37f   : > { %740 = vadd.xlane.f32.xlu0 %v739_v45 }
 0x380   : > { %1597 = vmatmul.mubr.msk.bf16.vlgmr.msra.gmra.mxu0 %vm391_vm5, %v742_v46 }
 0x381   : > { %1607 = vmatpush3.bf16.msra.mxu0 %v860_v47  ;;  %1608 = vmatprep.mubr.msk.bf16.mxu0 %vm1970_vm0, %v1969_v0 }
 0x382   : > { %1618 = vmatprep.subr.bf16.mxu0 %v1969_v0 }
 0x390   : > { %v846_v48 = vpop.xlane.xlu1 %845 }
 0x391   : > { %v847_v49 = vsub.f32 %v2229_v63, %v846_v48 }
 0x393   : > { %v848_v50 = vmul.f32 1.442695, %v847_v49 }
 0x394   : > { %v957_v51 = vpop.xlane.xlu1 %956 }
 0x395   : > { %1774 = vpow2.f32 %v848_v50  ;;  %v958_v52 = vsub.f32 %v2231_v5, %v957_v51 }
 0x397   : > { %v959_v53 = vmul.f32 1.442695, %v958_v52 }
 0x398   : > { %v1179_v54 = vpop.xlane.xlu1 %1178 }
 0x399   : > { %1776 = vpow2.f32 %v959_v53  ;;  %v1180_v55 = vsub.f32 %v2246_v16, %v1179_v54 }
 0x39b   : > { %v1181_v56 = vmul.f32 1.442695, %v1180_v55 }
 0x39c   : > { %v966_v60 = vpop.permute.xlu1 %965 }
 0x39d   : > { %1778 = vpow2.f32 %v1181_v56  ;;  %v971_v1 = vsel %vm405_vm4, %v966_v60, 0  ;;  %v1765_v60 = vld [vmem:[#allocation10] sm:$0xff]  }
 0x3a0   : > { %v1068_v57 = vpop.xlane.xlu0 %1067 }
 0x3a1   : > { %v1069_v58 = vsub.f32 %v2237_v10, %v1068_v57  ;;  %v1764_v57 = vld [vmem:[#allocation10 + $0x8] sm:$0xff]  }
 0x3a2   : > { %v1775_v59 = vpop.eup %1774  ;;  %1649 = vmatpush3.bf16.msra.mxu1 %v1764_v57 }
 0x3a3   : > { %v1070_v61 = vmul.f32 1.442695, %v1069_v58  ;;  %v850_v62 = vsel %vm391_vm5, %v1775_v59, 0.0  ;;  %v853_v63 = vpack.c.bf16 %v1775_v59, %v1775_v59  ;;  %1650 = vmatprep.subr.bf16.mxu1 %v1969_v0 }
 0x3a4   : > { %851 = vadd.xlane.f32.xlu1 %v850_v62  ;;  %v1077_v5 = vpop.permute.xlu0 %1076 }
 0x3a5   : > { %1780 = vpow2.f32 %v1070_v61  ;;  %1609 = vmatmul.mubr.msk.bf16.vlgmr.msra.gmra.mxu0 %vm391_vm5, %v853_v63  ;;  %v1082_v8 = vsel %vm405_vm4, %v1077_v5, 0 }
 0x3a6   : > { %v1777_v2 = vpop.eup %1776  ;;  %1619 = vmatpush3.bf16.msra.mxu0 %v971_v1  ;;  %1620 = vmatprep.mubr.msk.bf16.mxu0 %vm1970_vm0, %v1969_v0 }
 0x3a7   : > { %v961_v3 = vsel %vm391_vm5, %v1777_v2, 0.0  ;;  %1630 = vmatprep.subr.bf16.mxu0 %v1969_v0  ;;  %v964_v7 = vpack.c.bf16 %v1777_v2, %v1777_v2  ;;  %1651 = vmatpush3.bf16.msra.mxu1 %v1765_v60 }
 0x3a8   : > { %962 = vadd.xlane.f32.xlu0 %v961_v3  ;;  %v1188_v11 = vpop.permute.xlu0 %1187 }
 0x3a9   : > { %v1193_v14 = vsel %vm405_vm4, %v1188_v11, 0 }
 0x3aa   : > { %v1779_v4 = vpop.eup %1778 }
 0x3ab   : > { %v1183_v6 = vsel %vm391_vm5, %v1779_v4, 0.0  ;;  %v1186_v17 = vpack.c.bf16 %v1779_v4, %v1779_v4 }
 0x3ac   : > { %1184 = vadd.xlane.f32.xlu0 %v1183_v6 }
 0x3ad   : > { %1621 = vmatmul.mubr.msk.bf16.vlgmr.msra.gmra.mxu0 %vm391_vm5, %v964_v7 }
 0x3ae   : > { %1631 = vmatpush3.bf16.msra.mxu0 %v1082_v8  ;;  %1632 = vmatprep.mubr.msk.bf16.mxu0 %vm1970_vm0, %v1969_v0 }
 0x3af   : > { %1642 = vmatprep.subr.bf16.mxu0 %v1969_v0 }
 0x3b2   : > { %v1781_v10 = vpop.eup %1780 }
 0x3b3   : > { %v1072_v12 = vsel %vm391_vm5, %v1781_v10, 0.0  ;;  %v1075_v13 = vpack.c.bf16 %v1781_v10, %v1781_v10 }
 0x3b4   : > { %1073 = vadd.xlane.f32.xlu1 %v1072_v12 }
 0x3b5   : > { %1633 = vmatmul.mubr.msk.bf16.vlgmr.msra.gmra.mxu0 %vm391_vm5, %v1075_v13 }
 0x3b6   : > { %1643 = vmatpush3.bf16.msra.mxu0 %v1193_v14  ;;  %1644 = vmatprep.mubr.msk.bf16.mxu0 %vm1970_vm0, %v1969_v0 }
 0x3b8   : > { %399 = vadd.xlane.f32.xlu1 %v398_v15 }
 0x3bb   : > { %v2304_v16 = vpop.f32.mrf.mxu0 }
 0x3bd   : > { %v1562_v18 = vpop.f32.mrf.mxu0  ;;  %1645 = vmatmul.mubr.msk.bf16.vlgmr.msra.gmra.mxu0 %vm391_vm5, %v1186_v17 }
 0x3bf   : > { %v446_v19 = vpop.f32.mrf.mxu0 }
 0x3c1   : > { %v1563_v20 = vpop.f32.mrf.mxu0 }
 0x3f8   : > { %v516_v21 = vpop.xlane.xlu1 %515 }
 0x3f9   : > { %1782 = vrcp.f32 %v516_v21 }
 0x400   : > { %v630_v22 = vpop.xlane.xlu0 %629 }
 0x401   : > { %1784 = vrcp.f32 %v630_v22 }
 0x406   : > { %v1783_v23 = vpop.eup %1782 }
 0x408   : > { %v741_v24 = vpop.xlane.xlu0 %740 }
 0x409   : > { %1786 = vrcp.f32 %v741_v24 }
 0x40e   : > { %v1785_v30 = vpop.eup %1784 }
 0x416   : > { %v1787_v38 = vpop.eup %1786 }
 0x42d   : > { %v852_v44 = vpop.xlane.xlu1 %851 }
 0x42e   : > { %1788 = vrcp.f32 %v852_v44 }
 0x430   : > { %v563_v25 = vpop.f32.mrf.mxu0 }
 0x431   : > { %v570_v26 = vmul.f32 %v1783_v23, %v563_v25  ;;  %v963_v45 = vpop.xlane.xlu0 %962 }
 0x432   : > { %v1574_v27 = vpop.f32.mrf.mxu0  ;;  %1790 = vrcp.f32 %v963_v45 }
 0x433   : > { %v571_v9 = vpack.c.bf16 %v570_v26, %v570_v26 }
 0x434   : > { %v566_v28 = vpop.f32.mrf.mxu0 }
 0x435   : > { %1239 = vrot.lane.b32.xlu0 %v571_v9, %s1980_s22  ;;  %v1185_v55 = vpop.xlane.xlu0 %1184  ;;  %s2320_s22 = scalar_lea.hbm %s2373_s4, %s1502_s11 }
 0x436   : > { %v1575_v29 = vpop.f32.mrf.mxu0 }
 0x438   : > { %v674_v31 = vpop.f32.mrf.mxu0 }
 0x439   : > { %v681_v32 = vmul.f32 %v1785_v30, %v674_v31 }
 0x43a   : > { %v1586_v33 = vpop.f32.mrf.mxu0 }
 0x43b   : > { %v682_v35 = vpack.c.bf16 %v681_v32, %v681_v32  ;;  %v1789_v46 = vpop.eup %1788  ;;  %v1497_v32 = vld [vmem:[%s2372_s3] ss:$0 sm:$0xff] }
 0x43c   : > { %v677_v36 = vpop.f32.mrf.mxu0 }
 0x43d   : > { %1242 = vrot.lane.b32.xlu1 %v682_v35, %s1981_s29  ;;  %v1074_v47 = vpop.xlane.xlu1 %1073  ;;  %s1347_s29 = scalar_lea.sflag [#allocation7], %s2135_s30 }
 0x43e   : > { %v1587_v37 = vpop.f32.mrf.mxu0  ;;  %1792 = vrcp.f32 %v1074_v47 }
 0x43f   : > { %v1791_v54 = vpop.eup %1790  ;;  %1794 = vrcp.f32 %v1185_v55 }
 0x440   : > { %v785_v34 = vpop.f32.mrf.mxu0 }
 0x441   : > { %v792_v39 = vmul.f32 %v1787_v38, %v785_v34  ;;  %v400_v15 = vpop.xlane.xlu1 %399 }
 0x442   : > { %v1598_v40 = vpop.f32.mrf.mxu0  ;;  %1796 = vrcp.f32 %v400_v15 }
 0x443   : > { %v793_v41 = vpack.c.bf16 %v792_v39, %v792_v39 }
 0x444   : > { %v788_v42 = vpop.f32.mrf.mxu0 }
 0x445   : > { %1245 = vrot.lane.b32.xlu1 %v793_v41, %s1982_s6  ;;  %s1987_s6 = smov [#allocation11]  }
 0x446   : > { %v1599_v43 = vpop.f32.mrf.mxu0 }
 0x44b   : > { %v1793_v1 = vpop.eup %1792 }
 0x44c   : > { %v1795_v8 = vpop.eup %1794 }
 0x44f   : > { %v1797_v17 = vpop.eup %1796 }
 0x450   : > { %v450_v19 = vmul.f32 %v1797_v17, %v2304_v16 }
 0x452   : > { %v451_v22 = vpack.c.bf16 %v450_v19, %v450_v19 }
 0x465   : > { %v896_v48 = vpop.f32.mrf.mxu0 }
 0x466   : > { %v903_v49 = vmul.f32 %v1789_v46, %v896_v48 }
 0x467   : > { %v1610_v50 = vpop.f32.mrf.mxu0 }
 0x468   : > { %v904_v51 = vpack.c.bf16 %v903_v49, %v903_v49 }
 0x469   : > { %v899_v52 = vpop.f32.mrf.mxu0 }
 0x46a   : > { %1248 = vrot.lane.b32.xlu0 %v904_v51, %s1983_s5  ;;  %s1882_s5 = sshll.u32 %s1987_s6, 4  ;;  %s1883_s5 = int_to_ptr.vmem [resolvable:$false] %s1882_s5 }
 0x46b   : > { %v1611_v53 = vpop.f32.mrf.mxu0  ;;  %p1885_p2 = scmp.lt.s32.totalorder %s2322_s24, %s1883_s5 }
 0x46d   : > { %v1007_v56 = vpop.f32.mrf.mxu0 }
 0x46e   : > { %v1014_v58 = vmul.f32 %v1791_v54, %v1007_v56 }
 0x46f   : > { %v1622_v59 = vpop.f32.mrf.mxu0 }
 0x470   : > { %v1015_v61 = vpack.c.bf16 %v1014_v58, %v1014_v58 }
 0x471   : > { %v1010_v62 = vpop.f32.mrf.mxu0 }
 0x472   : > { %1251 = vrot.lane.b32.xlu1 %v1015_v61, %s1984_s8  ;;  %s1884_s8 = scalar_lea.vmem %s1883_s5, 256 }
 0x473   : > { %v1623_v63 = vpop.f32.mrf.mxu0  ;;  %p1886_p13 = scmp.lt.s32.totalorder %s1884_s8, %s1878_s18 }
 0x475   : > { %v1118_v2 = vpop.f32.mrf.mxu0  ;;  %p1887_p0 = por %p1886_p13, %p1885_p2 }
 0x476   : > { %v1125_v3 = vmul.f32 %v1793_v1, %v1118_v2 }
 0x477   : > { %v1634_v4 = vpop.f32.mrf.mxu0  ;;  %p1888_p5 = pnand %p1887_p0, %p1881_p11 }
 0x478   : > { %v1126_v5 = vpack.c.bf16 %v1125_v3, %v1125_v3 }
 0x479   : > { %v1121_v6 = vpop.f32.mrf.mxu0 }
 0x47a   : > { %1254 = vrot.lane.b32.xlu0 %v1126_v5, %s1985_s9 }
 0x47b   : > { %v1635_v7 = vpop.f32.mrf.mxu0 }
 0x47d   : > { %v1229_v10 = vpop.f32.mrf.mxu0 }
 0x47e   : > { %v1236_v11 = vmul.f32 %v1795_v8, %v1229_v10 }
 0x47f   : > { %v1646_v12 = vpop.f32.mrf.mxu0 }
 0x480   : > { %v1237_v13 = vpack.c.bf16 %v1236_v11, %v1236_v11 }
 0x481   : > { %v1232_v0 = vpop.f32.mrf.mxu0 }
 0x482   : > { %1257 = vrot.lane.b32.xlu1 %v1237_v13, %s1986_s23 }
 0x483   : > { %v1647_v14 = vpop.f32.mrf.mxu0 }
 0x4a7   : > { %v1240_v20 = vpop.permute.xlu0 %1239 }
 0x4a8   : > { %v1261_v24 = vsel %vm344_vm3, %v451_v22, %v1240_v20 }
 0x4af   : > { %v1243_v18 = vpop.permute.xlu1 %1242 }
 0x4b0   : > { %v1263_v25 = vsel %vm391_vm5, %v1261_v24, %v1243_v18 }
 0x4b7   : > { %v1246_v21 = vpop.permute.xlu1 %1245 }
 0x4b8   : > { %v1266_v27 = vsel %vm1264_vm6, %v1263_v25, %v1246_v21 }
 0x4dc   : > { %v1249_v23 = vpop.permute.xlu0 %1248 }
 0x4dd   : > { %v1269_v28 = vsel %vm1267_vm7, %v1266_v27, %v1249_v23 }
 0x4e4   : > { %v1252_v26 = vpop.permute.xlu1 %1251 }
 0x4e5   : > { %v1272_v16 = vsel %vm1270_vm8, %v1269_v28, %v1252_v26 }
 0x4ec   : > { %v1255_v9 = vpop.permute.xlu0 %1254 }
 0x4ed   : > { %v1275_v29 = vsel %vm1273_vm9, %v1272_v16, %v1255_v9 }
 0x4f4   : > { %v1258_v30 = vpop.permute.xlu1 %1257 }
 0x4f5   : > { %v1278_v31 = vsel %vm1276_vm10, %v1275_v29, %v1258_v30 }
 0x4f6   : > { %1653 = vmatmul.mubr.msk.bf16.vlgmr.msra.gmra.mxu1 %vm278_vm1, %v1278_v31 }
 0x5b6   : > { %v1339_v33 = vpop.f32.mrf.mxu1 }
 0x5b7   : > { %v1340_v35 = vadd.f32 %v1497_v32, %v1339_v33 }
 0x5b8   : > { %v1654_v36 = vpop.f32.mrf.mxu1 }
 0x5b9   : > { %1345 = vst.msk [vmem:[%s255_s12] sm:$0xff] %vm278_vm1, %v1340_v35 }
 0x5ba   : > { %v1342_v37 = vpop.f32.mrf.mxu1 }
 0x5bb   : > { %1891 = shalt.err (!%p1888_p5)
}
 0x5bc   : > { %s1892_s9 = scalar_lea.hbm %s2320_s22, 128  ;;  %s1896_s25 = scalar_lea.hbm %s2373_s4, 256 }
 0x5bd   : > { %p1893_p10 = scmp.ne.s32.totalorder %s2320_s22, %s1892_s9  ;;  %p1897_p6 = scmp.lt.s32.totalorder %s2320_s22, %s2373_s4 }
 0x5be   : > { %p1898_p12 = scmp.lt.s32.totalorder %s1896_s25, %s1892_s9 }
 0x5bf   : > { %p1894_p1 = pnand %p1893_p10, %p2108_p7 }
 0x5c0   : > { %p1899_p3 = por %p1898_p12, %p1897_p6 }
 0x5c1   : > { %p1895_p4 = pneg %p1894_p1 }
 0x5c3   : > { %p1900_p8 = pnand %p1899_p3, %p1895_p4 }
 0x5c5   : > { %1903 = shalt.err (!%p1900_p8)
}
 0x5c6   : > { %1666 = dma.vmem_to_hbm [thread:$0]  (%p2108_p7), %s2322_s24, 128, %s2320_s22, %s1347_s29   ;;  %v1655_v38 = vpop.f32.mrf.mxu1 }
 0x5c7 PF: > { %s1373_s11 = sand.u32 1, %s1942_s15   ;;  %p2387_p9 = scmp.ne.s32.totalorder %s2380_s26, 0 }
 0x5c8   : > { %p2388_p11 = scmp.ge.s32.totalorder %s1962_s20, 2  ;;  %s1374_s12 = scalar_lea.sflag [#allocation7], %s1373_s11 }
 0x5ca   : > { %p1680_p2 = pnand %p2388_p11, %p2387_p9 }
 0x5cc   : > { %p1681_p13 = pneg %p1680_p2 }
 0x5ce   : > { %1937 = dma.done.wait (%p1681_p13), %s1374_s12, 128  }
 0x5cf   : > { %1939 = vsyncadd (%p1681_p13), %s1374_s12, 4294967168  ;;  %s21_s20 = sadd.s32 1, %s1962_s20   ;;  %s2389_s15 = smov %s1946_s16 }
 0x5d0   : > { %p18_p0 = scmp.ge.s32.totalorder %s21_s20, 4   ;;  %s2390_s16 = smov %s1950_s17 }
 0x5d1   : > { %s2391_s17 = smov %s2117_s7  ;;  %s2392_s18 = smov %s1958_s19 }
 0x5d2   : > { %s2393_s19 = smov %s2395_s21  ;;  %20 = sbr.rel (!%p18_p0) target bundleno = 7 (0x7), region = 94 }
 0x5d7   :  { %1379 = vsyncpa [#allocation6], 1 }
 0x5d8   :  { %1381 = vsyncpa [#allocation6 + $0x1], 1 }
 0x5d9   :  { %1382 = vsyncpa [#allocation9], 1 }
 0x5da   :  { %1383 = vsyncpa [#allocation7], 1 }
 0x5db   :  { %1385 = vsyncpa [#allocation7 + $0x1], 1 }

</bundles_post_ra>
